<compile_context>
chip_gen: v5e
topology: v5e:2x2
jax: 0.10.0
libtpu: 0.0.40
codegen_flags: <defaults>
</compile_context>

<pallas_src>
import jax
import jax.numpy as jnp
from jax.experimental import pallas as pl
from jax.experimental.pallas import tpu as pltpu


def _round_up(x, m):
    return (x + m - 1) // m * m


def _cdiv(a, b):
    return -(-a // b)


# ----------------------------------------------------------------------------
# Pallas kernel: one grid step == one BT tile through all n_agents critics.
# ----------------------------------------------------------------------------
def _critic_ns_fused_kernel(xs_ref, xa_ref, w1s_ref, w1a_ref, b1_ref,
                            w2_ref, b2_ref, w3_ref, b3_ref, q_ref):
    cdt = w1s_ref.dtype                                   # compute dtype (bf16 or f32)
    # layer 1 (all agents concatenated on N): state and last-action chunks summed.
    h1 = jnp.dot(xs_ref[...], w1s_ref[...], preferred_element_type=jnp.float32)
    h1 = h1 + jnp.dot(xa_ref[...], w1a_ref[...], preferred_element_type=jnp.float32)
    h1 = jnp.maximum(h1.astype(cdt) + b1_ref[...], 0)     # epilogue in compute dtype
    # layer 2 (block-diagonal keeps agents independent): one wide matmul.
    h2 = jnp.dot(h1, w2_ref[...], preferred_element_type=jnp.float32)
    h2 = jnp.maximum(h2.astype(cdt) + b2_ref[...], 0)
    # layer 3: (tb, AH_pad) @ (AH_pad, A_pad) -> (tb, A_pad); no h2 transpose needed.
    q = jnp.dot(h2, w3_ref[...], preferred_element_type=jnp.float32)
    q_ref[...] = (q + b3_ref[...]).astype(q_ref.dtype)


def _choose_bt_tiling(bt, *, tile_cap=1024, min_steps=2):
    """Pick a 128-multiple row tile that (a) gives >=2 grid steps when possible (v7x
    megacore) and (b) minimizes padded rows.  Returns (tile_rows, grid_len, padded_rows)."""
    m = _round_up(bt, 128) // 128                     # number of 128-row blocks
    steps = min(m, max(min_steps, _cdiv(m * 128, tile_cap)))
    blocks_per_tile = _cdiv(m, steps)
    tb = 128 * blocks_per_tile
    grid = _cdiv(m, blocks_per_tile)
    return tb, grid, tb * grid


# ----------------------------------------------------------------------------
# One-time parameter preparation (hoisted out of the jitted forward path).
# ----------------------------------------------------------------------------
def prepare_params(params, state_dim, *, compute_dtype=jnp.bfloat16):
    """Fuse the per-agent weights into MXU-friendly matrices.  Run once, outside jit."""
    w1, b1, w2, b2, w3, b3 = (params[k] for k in ("w1", "b1", "w2", "b2", "w3", "b3"))
    A, D, H = w1.shape
    sd = state_dim
    ad = D - sd
    AH = A * H
    sd_p = _round_up(sd, 16)
    ad_p = _round_up(ad, 16)
    ah_pad = _round_up(AH, 128)
    a_pad = _round_up(A, 8)

    # layer 1: agents share the input -> concatenate along the output axis; split the
    # contraction dim into state / last-action chunks (separate kernel operands).
    w1_cat = jnp.transpose(w1, (1, 0, 2)).reshape(D, AH)
    w1s = jnp.pad(w1_cat[:sd], ((0, sd_p - sd), (0, ah_pad - AH)))
    w1a = jnp.pad(w1_cat[sd:], ((0, ad_p - ad), (0, ah_pad - AH)))
    b1c = jnp.pad(b1.reshape(1, AH), ((0, 0), (0, ah_pad - AH)))
    # layer 2: block-diagonal so each agent only sees its own hidden block.
    w2_bd = jnp.zeros((ah_pad, ah_pad), jnp.float32)
    for a in range(A):
        w2_bd = w2_bd.at[a * H:(a + 1) * H, a * H:(a + 1) * H].set(w2[a])
    b2c = jnp.pad(b2.reshape(1, AH), ((0, 0), (0, ah_pad - AH)))
    # layer 3: one column per agent (padded to 8) -> (tb, A_pad) result in the kernel.
    w3t = jnp.zeros((ah_pad, a_pad), jnp.float32)
    for a in range(A):
        w3t = w3t.at[a * H:(a + 1) * H, a].set(w3[a, :, 0])
    b3r = jnp.zeros((1, a_pad), jnp.float32).at[0, :A].set(b3[:, 0, 0])

    return {
        "w1s": w1s.astype(compute_dtype),
        "w1a": w1a.astype(compute_dtype),
        "b1": b1c.astype(compute_dtype),
        "w2": w2_bd.astype(compute_dtype),
        "b2": b2c.astype(compute_dtype),
        "w3t": w3t.astype(compute_dtype),
        "b3": b3r.astype(jnp.float32),       # final bias added after f32 accumulation
    }


# ----------------------------------------------------------------------------
# Jitted forward: build_inputs + single fused pallas_call + output reshape.
# ----------------------------------------------------------------------------
@jax.jit
def forward(state, actions_onehot, prep):
    """state: (bs, max_t, state_dim); actions_onehot: (bs, max_t, n_agents, n_actions).
    Returns q: (bs, max_t, n_agents, 1) float32."""
    bs, max_t, sd = state.shape
    A = actions_onehot.shape[2]
    BT = bs * max_t
    sd_p = prep["w1s"].shape[0]
    ad_p = prep["w1a"].shape[0]
    ah_pad = prep["w2"].shape[0]
    a_pad = prep["w3t"].shape[1]
    cdt = prep["w1s"].dtype

    # _build_inputs (obs_last_action=True, t=None): last actions shifted by one step.
    state_flat = state.reshape(BT, sd)
    zeros0 = jnp.zeros_like(actions_onehot[:, :1])
    last_act = jnp.concatenate([zeros0, actions_onehot[:, :-1]], axis=1).reshape(BT, -1)
    ad = last_act.shape[1]

    tb, grid_n, bt_pad = _choose_bt_tiling(BT)

    # One fused pad+cast per operand (rows to the tile multiple, features to 16); no
    # concatenated / 128-wide-padded x is materialized in HBM.
    xs = jnp.pad(state_flat, ((0, bt_pad - BT), (0, sd_p - sd))).astype(cdt)
    xa = jnp.pad(last_act, ((0, bt_pad - BT), (0, ad_p - ad))).astype(cdt)

    grid_spec = pltpu.PrefetchScalarGridSpec(
        num_scalar_prefetch=0,
        grid=(grid_n,),
        in_specs=[
            pl.BlockSpec((tb, sd_p), lambda i: (i, 0)),        # state tile   (pipelined)
            pl.BlockSpec((tb, ad_p), lambda i: (i, 0)),        # last-act tile(pipelined)
            pl.BlockSpec((sd_p, ah_pad), lambda i: (0, 0)),    # W1_state     (resident)
            pl.BlockSpec((ad_p, ah_pad), lambda i: (0, 0)),    # W1_act       (resident)
            pl.BlockSpec((1, ah_pad), lambda i: (0, 0)),       # b1
            pl.BlockSpec((ah_pad, ah_pad), lambda i: (0, 0)),  # W2 block-diag(resident)
            pl.BlockSpec((1, ah_pad), lambda i: (0, 0)),       # b2
            pl.BlockSpec((ah_pad, a_pad), lambda i: (0, 0)),   # W3 columns   (resident)
            pl.BlockSpec((1, a_pad), lambda i: (0, 0)),        # b3
        ],
        out_specs=pl.BlockSpec((tb, a_pad), lambda i: (i, 0)),
    )

    q_pad = pl.pallas_call(
        _critic_ns_fused_kernel,
        out_shape=jax.ShapeDtypeStruct((bt_pad, a_pad), jnp.float32),
        grid_spec=grid_spec,
        compiler_params=pltpu.CompilerParams(dimension_semantics=("parallel",)),
    )(xs, xa, prep["w1s"], prep["w1a"], prep["b1"], prep["w2"], prep["b2"],
      prep["w3t"], prep["b3"])

    # torch: qs[i] = critic_i(inputs).view(bs, max_t, 1, -1); q = cat(qs, dim=2)
    return q_pad[:BT, :A].reshape(bs, max_t, A, 1)


# ----------------------------------------------------------------------------
# Plain-JAX glue: parameter init (PyTorch-Linear-like uniform) and a reference.
# ----------------------------------------------------------------------------
def init_params(key, n_agents, input_dim, hidden_dim):
    def uni(k, shape, fan_in):
        bound = 1.0 / jnp.sqrt(jnp.asarray(fan_in, jnp.float32))
        return jax.random.uniform(k, shape, jnp.float32, -bound, bound)

    ks = jax.random.split(key, 6)
    return {
        "w1": uni(ks[0], (n_agents, input_dim, hidden_dim), input_dim),
        "b1": uni(ks[1], (n_agents, 1, hidden_dim), input_dim),
        "w2": uni(ks[2], (n_agents, hidden_dim, hidden_dim), hidden_dim),
        "b2": uni(ks[3], (n_agents, 1, hidden_dim), hidden_dim),
        "w3": uni(ks[4], (n_agents, hidden_dim, 1), hidden_dim),
        "b3": uni(ks[5], (n_agents, 1, 1), hidden_dim),
    }


def reference_forward(state, actions_onehot, params):
    """Per-agent f32 reference (HIGHEST precision matmuls)."""
    hp = jax.lax.Precision.HIGHEST
    bs, max_t, _ = state.shape
    zeros0 = jnp.zeros_like(actions_onehot[:, :1])
    last_act = jnp.concatenate([zeros0, actions_onehot[:, :-1]], axis=1).reshape(bs * max_t, -1)
    inputs = jnp.concatenate([state.reshape(bs * max_t, -1), last_act], axis=1)
    qs = []
    n_agents = params["w1"].shape[0]
    for a in range(n_agents):
        h1 = jnp.maximum(jnp.dot(inputs, params["w1"][a], precision=hp) + params["b1"][a], 0.0)
        h2 = jnp.maximum(jnp.dot(h1, params["w2"][a], precision=hp) + params["b2"][a], 0.0)
        q = jnp.dot(h2, params["w3"][a], precision=hp) + params["b3"][a]
        qs.append(q.reshape(bs, max_t, 1, -1))
    return jnp.concatenate(qs, axis=2)


if __name__ == "__main__":
    # Small, deterministic config.
    bs, max_t = 2, 8
    n_agents, n_actions = 3, 5
    state_dim = 24
    hidden_dim = 64
    input_dim = state_dim + n_agents * n_actions    # obs_last_action=True

    key = jax.random.PRNGKey(0)
    k_state, k_act, k_params = jax.random.split(key, 3)

    state = jax.random.normal(k_state, (bs, max_t, state_dim), jnp.float32)
    act_idx = jax.random.randint(k_act, (bs, max_t, n_agents), 0, n_actions)
    actions_onehot = jax.nn.one_hot(act_idx, n_actions, dtype=jnp.float32)

    params = init_params(k_params, n_agents, input_dim, hidden_dim)
    q_ref = reference_forward(state, actions_onehot, params)

    # Default path: bf16 operands, f32 accumulation (native MXU on v5e/v6e/v7x).
    prep = prepare_params(params, state_dim)                      # one-time, outside jit
    q = jax.block_until_ready(forward(state, actions_onehot, prep))
    assert q.shape == (bs, max_t, n_agents, 1), q.shape
    assert jnp.allclose(q, q_ref, atol=5e-2, rtol=5e-2), "bf16 path mismatch vs reference"

    # f32 path (numerics validation; also what a v5e user might prefer for the epilogue).
    prep32 = prepare_params(params, state_dim, compute_dtype=jnp.float32)
    q32 = jax.block_until_ready(forward(state, actions_onehot, prep32))
    assert q32.shape == (bs, max_t, n_agents, 1), q32.shape
    assert jnp.allclose(q32, q_ref, atol=2e-3, rtol=2e-3), "f32 path mismatch vs reference"

    print("KERNEL_OK")
</pallas_src>

<mosaic_0001>
module attributes {stable_mosaic.version = 11 : i64} {
  func.func @_critic_ns_fused_kernel(%arg0: i32, %arg1: memref<128x32xbf16, #tpu.memory_space<vmem>>, %arg2: memref<128x16xbf16, #tpu.memory_space<vmem>>, %arg3: memref<32x256xbf16, #tpu.memory_space<vmem>>, %arg4: memref<16x256xbf16, #tpu.memory_space<vmem>>, %arg5: memref<1x256xbf16, #tpu.memory_space<vmem>>, %arg6: memref<256x256xbf16, #tpu.memory_space<vmem>>, %arg7: memref<1x256xbf16, #tpu.memory_space<vmem>>, %arg8: memref<256x8xbf16, #tpu.memory_space<vmem>>, %arg9: memref<1x8xf32, #tpu.memory_space<vmem>>, %arg10: memref<128x8xf32, #tpu.memory_space<vmem>>) attributes {dimension_semantics = [#tpu.dimension_semantics<parallel>], iteration_bounds = array<i64: 1>, scalar_prefetch = 0 : i64, scratch_operands = 0 : i64, tpu.core_type = #tpu.core_type<tc>, window_params = [{transform_indices = @transform_0, window_bounds = array<i64: 128, 32>}, {transform_indices = @transform_1, window_bounds = array<i64: 128, 16>}, {pipeline_mode = #tpu.pipeline_mode<synchronous>, transform_indices = @transform_2, window_bounds = array<i64: 32, 256>}, {pipeline_mode = #tpu.pipeline_mode<synchronous>, transform_indices = @transform_3, window_bounds = array<i64: 16, 256>}, {pipeline_mode = #tpu.pipeline_mode<synchronous>, transform_indices = @transform_4, window_bounds = array<i64: 1, 256>}, {pipeline_mode = #tpu.pipeline_mode<synchronous>, transform_indices = @transform_5, window_bounds = array<i64: 256, 256>}, {pipeline_mode = #tpu.pipeline_mode<synchronous>, transform_indices = @transform_6, window_bounds = array<i64: 1, 256>}, {pipeline_mode = #tpu.pipeline_mode<synchronous>, transform_indices = @transform_7, window_bounds = array<i64: 256, 8>}, {pipeline_mode = #tpu.pipeline_mode<synchronous>, transform_indices = @transform_8, window_bounds = array<i64: 1, 8>}, {transform_indices = @transform_9, window_bounds = array<i64: 128, 8>}]} {
    %c0 = arith.constant 0 : index
    %c0_0 = arith.constant 0 : index
    %0 = vector.load %arg1[%c0, %c0_0] : memref<128x32xbf16, #tpu.memory_space<vmem>>, vector<128x32xbf16>
    %c0_1 = arith.constant 0 : index
    %c0_2 = arith.constant 0 : index
    %1 = vector.load %arg3[%c0_1, %c0_2] : memref<32x256xbf16, #tpu.memory_space<vmem>>, vector<32x256xbf16>
    %cst = arith.constant dense<0.000000e+00> : vector<128x256xf32>
    %2 = tpu.matmul %0, %1, %cst {dimension_numbers = #tpu.dot_dimension_numbers<[1], [0], [0], [1], [0, 0, 1, 1], [], []>} : vector<128x32xbf16>, vector<32x256xbf16>, vector<128x256xf32> -> vector<128x256xf32>
    %c0_3 = arith.constant 0 : index
    %c0_4 = arith.constant 0 : index
    %3 = vector.load %arg2[%c0_3, %c0_4] : memref<128x16xbf16, #tpu.memory_space<vmem>>, vector<128x16xbf16>
    %c0_5 = arith.constant 0 : index
    %c0_6 = arith.constant 0 : index
    %4 = vector.load %arg4[%c0_5, %c0_6] : memref<16x256xbf16, #tpu.memory_space<vmem>>, vector<16x256xbf16>
    %cst_7 = arith.constant dense<0.000000e+00> : vector<128x256xf32>
    %5 = tpu.matmul %3, %4, %cst_7 {dimension_numbers = #tpu.dot_dimension_numbers<[1], [0], [0], [1], [0, 0, 1, 1], [], []>} : vector<128x16xbf16>, vector<16x256xbf16>, vector<128x256xf32> -> vector<128x256xf32>
    %6 = arith.addf %2, %5 : vector<128x256xf32>
    %7 = arith.truncf %6 : vector<128x256xf32> to vector<128x256xbf16>
    %c0_8 = arith.constant 0 : index
    %c0_9 = arith.constant 0 : index
    %8 = vector.load %arg5[%c0_8, %c0_9] : memref<1x256xbf16, #tpu.memory_space<vmem>>, vector<1x256xbf16>
    %9 = vector.broadcast %8 : vector<1x256xbf16> to vector<128x256xbf16>
    %10 = arith.addf %7, %9 : vector<128x256xbf16>
    %cst_10 = arith.constant 0.000000e+00 : bf16
    %11 = vector.broadcast %cst_10 : bf16 to vector<128x256xbf16>
    %12 = arith.maximumf %10, %11 : vector<128x256xbf16>
    %c0_11 = arith.constant 0 : index
    %c0_12 = arith.constant 0 : index
    %13 = vector.load %arg6[%c0_11, %c0_12] : memref<256x256xbf16, #tpu.memory_space<vmem>>, vector<256x256xbf16>
    %cst_13 = arith.constant dense<0.000000e+00> : vector<128x256xf32>
    %14 = tpu.matmul %12, %13, %cst_13 {dimension_numbers = #tpu.dot_dimension_numbers<[1], [0], [0], [1], [0, 0, 1, 1], [], []>} : vector<128x256xbf16>, vector<256x256xbf16>, vector<128x256xf32> -> vector<128x256xf32>
    %15 = arith.truncf %14 : vector<128x256xf32> to vector<128x256xbf16>
    %c0_14 = arith.constant 0 : index
    %c0_15 = arith.constant 0 : index
    %16 = vector.load %arg7[%c0_14, %c0_15] : memref<1x256xbf16, #tpu.memory_space<vmem>>, vector<1x256xbf16>
    %17 = vector.broadcast %16 : vector<1x256xbf16> to vector<128x256xbf16>
    %18 = arith.addf %15, %17 : vector<128x256xbf16>
    %cst_16 = arith.constant 0.000000e+00 : bf16
    %19 = vector.broadcast %cst_16 : bf16 to vector<128x256xbf16>
    %20 = arith.maximumf %18, %19 : vector<128x256xbf16>
    %c0_17 = arith.constant 0 : index
    %c0_18 = arith.constant 0 : index
    %21 = vector.load %arg8[%c0_17, %c0_18] : memref<256x8xbf16, #tpu.memory_space<vmem>>, vector<256x8xbf16>
    %cst_19 = arith.constant dense<0.000000e+00> : vector<128x8xf32>
    %22 = tpu.matmul %20, %21, %cst_19 {dimension_numbers = #tpu.dot_dimension_numbers<[1], [0], [0], [1], [0, 0, 1, 1], [], []>} : vector<128x256xbf16>, vector<256x8xbf16>, vector<128x8xf32> -> vector<128x8xf32>
    %c0_20 = arith.constant 0 : index
    %c0_21 = arith.constant 0 : index
    %23 = vector.load %arg9[%c0_20, %c0_21] : memref<1x8xf32, #tpu.memory_space<vmem>>, vector<1x8xf32>
    %24 = vector.broadcast %23 : vector<1x8xf32> to vector<128x8xf32>
    %25 = arith.addf %22, %24 : vector<128x8xf32>
    %c0_22 = arith.constant 0 : index
    %c0_23 = arith.constant 0 : index
    %26 = vector.load %arg10[%c0_22, %c0_23] : memref<128x8xf32, #tpu.memory_space<vmem>>, vector<128x8xf32>
    tpu.vector_store %arg10[%c0_22, %c0_23], %25 {strides = array<i32>} : memref<128x8xf32, #tpu.memory_space<vmem>>, vector<128x8xf32>,
    return
  }
  func.func @transform_0(%arg0: i32) -> (i32, i32) {
    %c0_i32 = arith.constant 0 : i32
    %c0_i32_0 = arith.constant 0 : i32
    return %arg0, %c0_i32 : i32, i32
  }
  func.func @transform_1(%arg0: i32) -> (i32, i32) {
    %c0_i32 = arith.constant 0 : i32
    %c0_i32_0 = arith.constant 0 : i32
    return %arg0, %c0_i32 : i32, i32
  }
  func.func @transform_2(%arg0: i32) -> (i32, i32) {
    %c0_i32 = arith.constant 0 : i32
    %c0_i32_0 = arith.constant 0 : i32
    %c0_i32_1 = arith.constant 0 : i32
    return %c0_i32, %c0_i32_0 : i32, i32
  }
  func.func @transform_3(%arg0: i32) -> (i32, i32) {
    %c0_i32 = arith.constant 0 : i32
    %c0_i32_0 = arith.constant 0 : i32
    %c0_i32_1 = arith.constant 0 : i32
    return %c0_i32, %c0_i32_0 : i32, i32
  }
  func.func @transform_4(%arg0: i32) -> (i32, i32) {
    %c0_i32 = arith.constant 0 : i32
    %c0_i32_0 = arith.constant 0 : i32
    %c0_i32_1 = arith.constant 0 : i32
    return %c0_i32, %c0_i32_0 : i32, i32
  }
  func.func @transform_5(%arg0: i32) -> (i32, i32) {
    %c0_i32 = arith.constant 0 : i32
    %c0_i32_0 = arith.constant 0 : i32
    %c0_i32_1 = arith.constant 0 : i32
    return %c0_i32, %c0_i32_0 : i32, i32
  }
  func.func @transform_6(%arg0: i32) -> (i32, i32) {
    %c0_i32 = arith.constant 0 : i32
    %c0_i32_0 = arith.constant 0 : i32
    %c0_i32_1 = arith.constant 0 : i32
    return %c0_i32, %c0_i32_0 : i32, i32
  }
  func.func @transform_7(%arg0: i32) -> (i32, i32) {
    %c0_i32 = arith.constant 0 : i32
    %c0_i32_0 = arith.constant 0 : i32
    %c0_i32_1 = arith.constant 0 : i32
    return %c0_i32, %c0_i32_0 : i32, i32
  }
  func.func @transform_8(%arg0: i32) -> (i32, i32) {
    %c0_i32 = arith.constant 0 : i32
    %c0_i32_0 = arith.constant 0 : i32
    %c0_i32_1 = arith.constant 0 : i32
    return %c0_i32, %c0_i32_0 : i32, i32
  }
  func.func @transform_9(%arg0: i32) -> (i32, i32) {
    %c0_i32 = arith.constant 0 : i32
    %c0_i32_0 = arith.constant 0 : i32
    return %arg0, %c0_i32 : i32, i32
  }
}

</mosaic_0001>

<bundles_post_ra>
// kernel: forward.1
= control target key start
LH: loop header
LB: loop body
LE: loop exit
PB: predicated region body
PF: predicated region fallthrough
CT: control target
= control target key end

     0   :  { %vm121_vm0 = vcmask 130048   ;;  %vm304_vm1 = vcmask 261120   ;;  %vm1423_vm2 = vcmask 64512   ;;  %s2446_s3 = inlined_call_operand.vmem [shape: bf16[16,256], index: 3, kind: input, shape index: {}]   ;;  %s2447_s1 = inlined_call_operand.vmem [shape: bf16[128,16], index: 1, kind: input, shape index: {}]   ;;  %s2448_s2 = inlined_call_operand.vmem [shape: bf16[32,256], index: 2, kind: input, shape index: {}]   ;;  %s2449_s5 = inlined_call_operand.vmem [shape: bf16[256,256], index: 5, kind: input, shape index: {}]   ;;  %s2450_s0 = inlined_call_operand.vmem [shape: bf16[128,32], index: 0, kind: input, shape index: {}]   ;;  %s2451_s4 = inlined_call_operand.vmem [shape: bf16[1,256], index: 4, kind: input, shape index: {}]   ;;  %s2452_s6 = inlined_call_operand.vmem [shape: bf16[1,256], index: 6, kind: input, shape index: {}]   ;;  %s2453_s7 = inlined_call_operand.vmem [shape: bf16[256,8], index: 7, kind: input, shape index: {}]   ;;  %s2454_s8 = inlined_call_operand.vmem [shape: f32[1,8], index: 8, kind: input, shape index: {}]   ;;  %s2455_s9 = inlined_call_operand.vmem [shape: f32[128,8], index: 9, kind: output, shape index: {}]  }
   0x1   :  { %v1478_v0 = vld [vmem:[%s2446_s3] sm:$0xf]  ;;  %v1777_v1 = vld [vmem:[%s2446_s3 + $0x4] sm:$0xf0]  ;;  %v1776_v2 = vld [vmem:[%s2446_s3 + $0x4] sm:$0xf] }
   0x2   :  { %v1479_v3 = vor.u32 %v1777_v1, %v1478_v0  ;;  %v1480_v4 = vld [vmem:[%s2446_s3 + $0x8] sm:$0xf0]  ;;  %v1772_v5 = vld [vmem:[%s2447_s1 + $0x20] sm:$0xff]  ;;  %v1542_v6 = vld [vmem:[%s2448_s2 + $0x10] sm:$0xf] }
   0x3   :  { %v1483_v7 = vor.u32 %v1776_v2, %v1480_v4  ;;  %v1767_v8 = vld [vmem:[%s2448_s2 + $0x14] sm:$0xf0]  ;;  %v1766_v9 = vld [vmem:[%s2448_s2 + $0x14] sm:$0xf]  ;;  %v1544_v10 = vld [vmem:[%s2448_s2 + $0x18] sm:$0xf0] }
   0x4   :  { %1826 = vmatpush.bf16.msra.mxu2 %v1479_v3  ;;  %v1543_v11 = vor.u32 %v1767_v8, %v1542_v6  ;;  %v1547_v12 = vor.u32 %v1766_v9, %v1544_v10  ;;  %153 = vmatpush.bf16.msra.mxu0 %v1479_v3  ;;  %v1534_v13 = vld [vmem:[%s2448_s2] sm:$0xf]  ;;  %v1765_v14 = vld [vmem:[%s2448_s2 + $0x4] sm:$0xf0]  ;;  %v1764_v15 = vld [vmem:[%s2448_s2 + $0x4] sm:$0xf] }
   0x5   :  { %1827 = vmatpush.bf16.msra.mxu3 %v1483_v7  ;;  %202 = vmatpush.bf16.msra.mxu1 %v1483_v7  ;;  %v1535_v16 = vor.u32 %v1765_v14, %v1534_v13  ;;  %v1536_v17 = vld [vmem:[%s2448_s2 + $0x8] sm:$0xf0]  ;;  %v1768_v20 = vld [vmem:[%s2447_s1] sm:$0xff]  ;;  %v1774_v21 = vld [vmem:[%s2447_s1 + $0x30] sm:$0xff] }
   0x6   :  { %v1539_v18 = vor.u32 %v1764_v15, %v1536_v17  ;;  %v1773_v19 = vld [vmem:[%s2447_s1 + $0x28] sm:$0xff]  ;;  %v1775_v23 = vld [vmem:[%s2447_s1 + $0x38] sm:$0xff]  ;;  %v1792_v24 = vld [vmem:[%s2449_s5 + $0x74] sm:$0xf] }
   0x7   :  { %1488 = vmatmul.msk.bf16.vlgmr.msra.gmra.mxu2 %vm121_vm0, %v1772_v5  ;;  %1484 = vmatmul.msk.bf16.vlgmr.msra.gmra.mxu0 %vm121_vm0, %v1768_v20  ;;  %v1769_v22 = vld [vmem:[%s2447_s1 + $0x8] sm:$0xff]  ;;  %v1624_v25 = vld [vmem:[%s2449_s5 + $0x78] sm:$0xf0]  ;;  %v1808_v26 = vld [vmem:[%s2449_s5 + $0xf4] sm:$0xf] }
   0x8   :  { %335 = vmatpush.bf16.msrb.mxu2 %v1543_v11  ;;  %1496 = vmatmul.msk.bf16.vlgmr.msra.gmra.mxu3 %vm121_vm0, %v1772_v5  ;;  %v1627_v27 = vor.u32 %v1792_v24, %v1624_v25  ;;  %v1688_v28 = vld [vmem:[%s2449_s5 + $0xf8] sm:$0xf0]  ;;  %v1770_v29 = vld [vmem:[%s2447_s1 + $0x10] sm:$0xff]  ;;  %v1756_v31 = vld [vmem:[%s2450_s0] sm:$0xff] }
   0x9   :  { %384 = vmatpush.bf16.msrb.mxu3 %v1547_v12  ;;  %1492 = vmatmul.msk.bf16.vlgmr.msra.gmra.mxu1 %vm121_vm0, %v1768_v20  ;;  %v1691_v30 = vor.u32 %v1808_v26, %v1688_v28  ;;  %v1790_v32 = vld [vmem:[%s2449_s5 + $0x64] sm:$0xf]  ;;  %v1616_v33 = vld [vmem:[%s2449_s5 + $0x68] sm:$0xf0]  ;;  %v1771_v37 = vld [vmem:[%s2447_s1 + $0x18] sm:$0xff] }
   0xa   :  { %v1806_v34 = vld [vmem:[%s2449_s5 + $0xe4] sm:$0xf]  ;;  %v1619_v35 = vor.u32 %v1790_v32, %v1616_v33  ;;  %v1680_v36 = vld [vmem:[%s2449_s5 + $0xe8] sm:$0xf0]  ;;  %v1788_v40 = vld [vmem:[%s2449_s5 + $0x54] sm:$0xf] }
   0xb   :  { %v1683_v38 = vor.u32 %v1806_v34, %v1680_v36  ;;  %v1757_v39 = vld [vmem:[%s2450_s0 + $0x8] sm:$0xff]  ;;  %v1608_v41 = vld [vmem:[%s2449_s5 + $0x58] sm:$0xf0]  ;;  %v1804_v42 = vld [vmem:[%s2449_s5 + $0xd4] sm:$0xf] }
   0xc   :  { %336 = vmatpush.bf16.msrb.mxu2 %v1535_v16  ;;  %v1611_v43 = vor.u32 %v1788_v40, %v1608_v41  ;;  %v1672_v44 = vld [vmem:[%s2449_s5 + $0xd8] sm:$0xf0]  ;;  %v1758_v46 = vld [vmem:[%s2450_s0 + $0x10] sm:$0xff]  ;;  %v1786_v47 = vld [vmem:[%s2449_s5 + $0x44] sm:$0xf] }
   0xd   :  { %385 = vmatpush.bf16.msrb.mxu3 %v1539_v18  ;;  %v1675_v45 = vor.u32 %v1804_v42, %v1672_v44  ;;  %v1600_v48 = vld [vmem:[%s2449_s5 + $0x48] sm:$0xf0]  ;;  %v1802_v49 = vld [vmem:[%s2449_s5 + $0xc4] sm:$0xf]  ;;  %v1759_v53 = vld [vmem:[%s2450_s0 + $0x18] sm:$0xff] }
   0xe   :  { %v1603_v50 = vor.u32 %v1786_v47, %v1600_v48  ;;  %v1664_v51 = vld [vmem:[%s2449_s5 + $0xc8] sm:$0xf0]  ;;  %v1784_v54 = vld [vmem:[%s2449_s5 + $0x34] sm:$0xf]  ;;  %v1592_v55 = vld [vmem:[%s2449_s5 + $0x38] sm:$0xf0] }
   0xf   :  { %v1667_v52 = vor.u32 %v1802_v49, %v1664_v51  ;;  %v1800_v56 = vld [vmem:[%s2449_s5 + $0xb4] sm:$0xf]  ;;  %v1595_v57 = vor.u32 %v1784_v54, %v1592_v55  ;;  %v1656_v58 = vld [vmem:[%s2449_s5 + $0xb8] sm:$0xf0]  ;;  %v1760_v60 = vld [vmem:[%s2450_s0 + $0x20] sm:$0xff] }
  0x10   :  { %906 = vmatpush.bf16.msra.mxu2 %v1627_v27  ;;  %v1659_v59 = vor.u32 %v1800_v56, %v1656_v58  ;;  %v1622_v61 = vld [vmem:[%s2449_s5 + $0x70] sm:$0xf]  ;;  %v1793_v62 = vld [vmem:[%s2449_s5 + $0x74] sm:$0xf0]  ;;  %v1614_v5 = vld [vmem:[%s2449_s5 + $0x60] sm:$0xf] }
  0x11   :  { %955 = vmatpush.bf16.msra.mxu3 %v1691_v30  ;;  %v1686_v63 = vld [vmem:[%s2449_s5 + $0xf0] sm:$0xf]  ;;  %v1623_v0 = vor.u32 %v1793_v62, %v1622_v61  ;;  %v1809_v1 = vld [vmem:[%s2449_s5 + $0xf4] sm:$0xf0]  ;;  %v1791_v6 = vld [vmem:[%s2449_s5 + $0x64] sm:$0xf0] }
  0x12   :  { %v1687_v2 = vor.u32 %v1809_v1, %v1686_v63  ;;  %v1678_v7 = vld [vmem:[%s2449_s5 + $0xe0] sm:$0xf]  ;;  %v1615_v8 = vor.u32 %v1791_v6, %v1614_v5  ;;  %v1807_v9 = vld [vmem:[%s2449_s5 + $0xe4] sm:$0xf0]  ;;  %v1782_v10 = vld [vmem:[%s2449_s5 + $0x24] sm:$0xf] }
  0x13   :  { %808 = vmatpush.bf16.msrb.mxu0 %v1623_v0  ;;  %v1584_v11 = vld [vmem:[%s2449_s5 + $0x28] sm:$0xf0]  ;;  %v1679_v12 = vor.u32 %v1807_v9, %v1678_v7  ;;  %v1798_v14 = vld [vmem:[%s2449_s5 + $0xa4] sm:$0xf]  ;;  %v1606_v20 = vld [vmem:[%s2449_s5 + $0x50] sm:$0xf] }
  0x14   :  { %907 = vmatpush.bf16.msra.mxu2 %v1619_v35  ;;  %857 = vmatpush.bf16.msrb.mxu1 %v1687_v2  ;;  %v1587_v13 = vor.u32 %v1782_v10, %v1584_v11  ;;  %v1648_v15 = vld [vmem:[%s2449_s5 + $0xa8] sm:$0xf0]  ;;  %v1805_v24 = vld [vmem:[%s2449_s5 + $0xd4] sm:$0xf0]  ;;  %v1598_v28 = vld [vmem:[%s2449_s5 + $0x40] sm:$0xf] }
  0x15   :  { %956 = vmatpush.bf16.msra.mxu3 %v1683_v38  ;;  %v1651_v16 = vor.u32 %v1798_v14, %v1648_v15  ;;  %v1761_v18 = vld [vmem:[%s2450_s0 + $0x28] sm:$0xff]  ;;  %v1662_v30 = vld [vmem:[%s2449_s5 + $0xc0] sm:$0xf]  ;;  %v1780_v33 = vld [vmem:[%s2449_s5 + $0x14] sm:$0xf] }
  0x16   :  { %v1803_v32 = vld [vmem:[%s2449_s5 + $0xc4] sm:$0xf0]  ;;  %v1576_v34 = vld [vmem:[%s2449_s5 + $0x18] sm:$0xf0]  ;;  %v1762_v41 = vld [vmem:[%s2450_s0 + $0x30] sm:$0xff] }
  0x17   :  { %1489 = vmatmul.msk.bf16.gmra.mxu2 %vm121_vm0, %v1773_v19  ;;  %1485 = vmatmul.msk.bf16.gmra.mxu0 %vm121_vm0, %v1769_v22  ;;  %v1663_v35 = vor.u32 %v1803_v32, %v1662_v30  ;;  %v1579_v36 = vor.u32 %v1780_v33, %v1576_v34  ;;  %v1640_v38 = vld [vmem:[%s2449_s5 + $0x98] sm:$0xf0]  ;;  %v1785_v44 = vld [vmem:[%s2449_s5 + $0x34] sm:$0xf0]  ;;  %v443_v48 = vld [vmem:[%s2451_s4] sm:$0x3] }
  0x18   :  { %1497 = vmatmul.msk.bf16.gmra.mxu3 %vm121_vm0, %v1773_v19  ;;  %908 = vmatpush.bf16.msra.mxu2 %v1611_v43  ;;  %v1590_v43 = vld [vmem:[%s2449_s5 + $0x30] sm:$0xf]  ;;  %v1801_v47 = vld [vmem:[%s2449_s5 + $0xb4] sm:$0xf0]  ;;  %445 = vst [vmem:[#allocation1] ss:$9 sm:$0xff] %v443_v48 }
  0x19   :  { %1493 = vmatmul.msk.bf16.gmra.mxu1 %vm121_vm0, %v1769_v22  ;;  %957 = vmatpush.bf16.msra.mxu3 %v1675_v45  ;;  %v1670_v22 = vld [vmem:[%s2449_s5 + $0xd0] sm:$0xf]  ;;  %v1646_v54 = vld [vmem:[%s2449_s5 + $0xa0] sm:$0xf]  ;;  %v1799_v56 = vld [vmem:[%s2449_s5 + $0xa4] sm:$0xf0] }
  0x1a   :  { %809 = vmatpush.bf16.msrb.mxu0 %v1615_v8  ;;  %858 = vmatpush.bf16.msrb.mxu1 %v1679_v12  ;;  %v1671_v25 = vor.u32 %v1805_v24, %v1670_v22  ;;  %v1654_v45 = vld [vmem:[%s2449_s5 + $0xb0] sm:$0xf]  ;;  %v1568_v58 = vld [vmem:[%s2449_s5 + $0x8] sm:$0xf0]  ;;  %v1794_v62 = vld [vmem:[%s2449_s5 + $0x84] sm:$0xf] }
  0x1b   :  { %v1655_v49 = vor.u32 %v1801_v47, %v1654_v45  ;;  %v1632_v63 = vld [vmem:[%s2449_s5 + $0x88] sm:$0xf0]  ;;  %v1763_v1 = vld [vmem:[%s2450_s0 + $0x38] sm:$0xff]  ;;  %v1574_v5 = vld [vmem:[%s2449_s5 + $0x10] sm:$0xf] }
  0x1c   :  { %909 = vmatpush.bf16.msra.mxu2 %v1603_v50  ;;  %v1635_v2 = vor.u32 %v1794_v62, %v1632_v63  ;;  %v1781_v6 = vld [vmem:[%s2449_s5 + $0x14] sm:$0xf0]  ;;  %v1638_v7 = vld [vmem:[%s2449_s5 + $0x90] sm:$0xf]  ;;  %v1566_v12 = vld [vmem:[%s2449_s5] sm:$0xf] }
  0x1d   :  { %958 = vmatpush.bf16.msra.mxu3 %v1667_v52  ;;  %v1582_v52 = vld [vmem:[%s2449_s5 + $0x20] sm:$0xf]  ;;  %v1575_v8 = vor.u32 %v1781_v6, %v1574_v5  ;;  %v1797_v9 = vld [vmem:[%s2449_s5 + $0x94] sm:$0xf0] }
  0x1e   :  { %859 = vmatpush.bf16.msrb.mxu1 %v1671_v25  ;;  %v1639_v10 = vor.u32 %v1797_v9, %v1638_v7  ;;  %v1630_v14 = vld [vmem:[%s2449_s5 + $0x80] sm:$0xf]  ;;  %v1825_v62 = vld [vmem:[%s2453_s7 + $0x78] sm:$0xff] }
  0x1f   :  { %v447_v24 = vld [vmem:[#allocation1 + $0x9] sm:$0xff]  ;;  %v1020_v25 = vld [vmem:[%s2452_s6] sm:$0x3] }
  0x20   :  { %910 = vmatpush.bf16.msra.mxu2 %v1595_v57  ;;  %v1778_v57 = vld [vmem:[%s2449_s5 + $0x4] sm:$0xf] }
  0x21   :  { %959 = vmatpush.bf16.msra.mxu3 %v1659_v59  ;;  %v1571_v61 = vor.u32 %v1778_v57, %v1568_v58 }
  0x22   :  { %860 = vmatpush.bf16.msrb.mxu1 %v1663_v35 }
  0x24   :  { %911 = vmatpush.bf16.msra.mxu2 %v1587_v13  ;;  %v1779_v13 = vld [vmem:[%s2449_s5 + $0x4] sm:$0xf0] }
  0x25   :  { %960 = vmatpush.bf16.msra.mxu3 %v1651_v16  ;;  %v1567_v16 = vor.u32 %v1779_v13, %v1566_v12 }
  0x26   :  { %861 = vmatpush.bf16.msrb.mxu1 %v1655_v49 }
  0x27   :  { %1490 = vmatmul.msk.bf16.gmra.mxu2 %vm121_vm0, %v1774_v21  ;;  %1486 = vmatmul.msk.bf16.gmra.mxu0 %vm121_vm0, %v1770_v29 }
  0x28   :  { %1498 = vmatmul.msk.bf16.gmra.mxu3 %vm121_vm0, %v1774_v21  ;;  %v1789_v21 = vld [vmem:[%s2449_s5 + $0x54] sm:$0xf0]  ;;  %912 = vmatpush.bf16.msra.mxu2 %v1579_v36 }
  0x29   :  { %1494 = vmatmul.msk.bf16.gmra.mxu1 %vm121_vm0, %v1770_v29  ;;  %v1787_v29 = vld [vmem:[%s2449_s5 + $0x44] sm:$0xf0] }
  0x2c   :  { %913 = vmatpush.bf16.msra.mxu2 %v1571_v61  ;;  %v1817_v61 = vld [vmem:[%s2453_s7 + $0x38] sm:$0xff] }
  0x37   :  { %1491 = vmatmul.msk.bf16.gmra.mxu2 %vm121_vm0, %v1775_v23  ;;  %1487 = vmatmul.msk.bf16.gmra.mxu0 %vm121_vm0, %v1771_v37 }
  0x38   :  { %1499 = vmatmul.msk.bf16.gmra.mxu3 %vm121_vm0, %v1775_v23  ;;  %v1607_v23 = vor.u32 %v1789_v21, %v1606_v20 }
  0x39   :  { %1495 = vmatmul.msk.bf16.gmra.mxu1 %vm121_vm0, %v1771_v37  ;;  %v1796_v37 = vld [vmem:[%s2449_s5 + $0x94] sm:$0xf] }
  0x3a   :  { %810 = vmatpush.bf16.msrb.mxu0 %v1607_v23  ;;  %v446_v23 = vld [vmem:[#allocation1] sm:$0xff] }
  0x3b   :  { %1022 = vst [vmem:[#allocation1] ss:$9 sm:$0xff] %v1020_v25  ;;  %v448_v35 = vpack.i.b16 %v446_v23, %v446_v23 }
  0x47   :  { %1548 = vmatmul.msk.bf16.vlgmr.msrb.gmra.mxu2 %vm304_vm1, %v1756_v31 }
  0x48   :  { %1556 = vmatmul.msk.bf16.vlgmr.msrb.gmra.mxu3 %vm304_vm1, %v1756_v31  ;;  %v1599_v31 = vor.u32 %v1787_v29, %v1598_v28 }
  0x4a   :  { %811 = vmatpush.bf16.msrb.mxu0 %v1599_v31 }
  0x57   :  { %1549 = vmatmul.msk.bf16.gmra.mxu2 %vm304_vm1, %v1757_v39 }
  0x58   :  { %1557 = vmatmul.msk.bf16.gmra.mxu3 %vm304_vm1, %v1757_v39  ;;  %v1643_v39 = vor.u32 %v1796_v37, %v1640_v38  ;;  %v451_v37 = vpack.i.b16 %v447_v24, %v447_v24 }
  0x5a   :  { %961 = vmatpush.bf16.msra.mxu3 %v1643_v39  ;;  %v450_v39 = vperm.slane %v448_v35, 0 }
  0x5c   :  { %v2225_v49 = vunpack.c.l.bf16 %v450_v39  ;;  %v1824_v39 = vld [vmem:[%s2453_s7 + $0x70] sm:$0xff] }
  0x5e   :  { %962 = vmatpush.bf16.msra.mxu3 %v1635_v2 }
  0x67   :  { %1550 = vmatmul.msk.bf16.gmra.mxu2 %vm304_vm1, %v1758_v46 }
  0x68   :  { %1558 = vmatmul.msk.bf16.gmra.mxu3 %vm304_vm1, %v1758_v46  ;;  %v1591_v46 = vor.u32 %v1785_v44, %v1590_v43  ;;  %v453_v43 = vperm.slane %v451_v37, 0 }
  0x6a   :  { %812 = vmatpush.bf16.msrb.mxu0 %v1591_v46 }
  0x77   :  { %1551 = vmatmul.msk.bf16.gmra.mxu2 %vm304_vm1, %v1759_v53 }
  0x78   :  { %1559 = vmatmul.msk.bf16.gmra.mxu3 %vm304_vm1, %v1759_v53  ;;  %v1783_v53 = vld [vmem:[%s2449_s5 + $0x24] sm:$0xf0] }
  0x79   :  { %v1583_v55 = vor.u32 %v1783_v53, %v1582_v52 }
  0x7b   :  { %813 = vmatpush.bf16.msrb.mxu0 %v1583_v55 }
  0x7f   :  { %814 = vmatpush.bf16.msrb.mxu0 %v1575_v8 }
  0x83   :  { %815 = vmatpush.bf16.msrb.mxu0 %v1567_v16 }
  0x84   :  { %v155_v20 = vpop.f32.mrf.mxu0 }
  0x86   :  { %v204_v22 = vpop.f32.mrf.mxu1 }
  0x87   :  { %1552 = vmatmul.msk.bf16.gmra.mxu2 %vm304_vm1, %v1760_v60  ;;  %1325 = vmatpush.bf16.msra.mxu0 %v1817_v61 }
  0x88   :  { %1560 = vmatmul.msk.bf16.gmra.mxu3 %vm304_vm1, %v1760_v60  ;;  %v1647_v60 = vor.u32 %v1799_v56, %v1646_v54  ;;  %v2227_v54 = vunpack.c.l.bf16 %v453_v43 }
  0x8a   :  { %v2052_v3 = vpop.f32.mrf.mxu2  ;;  %862 = vmatpush.bf16.msrb.mxu1 %v1647_v60 }
  0x8b   :  { %v2054_v4 = vpop.f32.mrf.mxu3 }
  0x8c   :  { %v157_v30 = vpop.f32.mrf.mxu0 }
  0x8e   :  { %863 = vmatpush.bf16.msrb.mxu1 %v1639_v10  ;;  %v206_v31 = vpop.f32.mrf.mxu1 }
  0x92   :  { %v2080_v17 = vpop.f32.mrf.mxu2 }
  0x93   :  { %v2085_v19 = vpop.f32.mrf.mxu3 }
  0x96   :  { %v209_v44 = vpop.f32.mrf.mxu1 }
  0x97   :  { %1553 = vmatmul.msk.bf16.gmra.mxu2 %vm304_vm1, %v1761_v18 }
  0x98   :  { %1561 = vmatmul.msk.bf16.gmra.mxu3 %vm304_vm1, %v1761_v18  ;;  %v1795_v18 = vld [vmem:[%s2449_s5 + $0x84] sm:$0xf0] }
  0x99   :  { %v1631_v21 = vor.u32 %v1795_v18, %v1630_v14 }
  0x9a   :  { %v2101_v26 = vpop.f32.mrf.mxu2 }
  0x9b   :  { %v2103_v27 = vpop.f32.mrf.mxu3  ;;  %864 = vmatpush.bf16.msrb.mxu1 %v1631_v21 }
  0x9e   :  { %v211_v6 = vpop.f32.mrf.mxu1 }
  0x9f   :  { %1374 = vmatpush.bf16.msra.mxu1 %v1825_v62 }
  0xa2   :  { %v2129_v40 = vpop.f32.mrf.mxu2 }
  0xa3   :  { %v2134_v42 = vpop.f32.mrf.mxu3  ;;  %1375 = vmatpush.bf16.msra.mxu1 %v1824_v39 }
  0xa7   :  { %1554 = vmatmul.msk.bf16.gmra.mxu2 %vm304_vm1, %v1762_v41 }
  0xa8   :  { %1562 = vmatmul.msk.bf16.gmra.mxu3 %vm304_vm1, %v1762_v41  ;;  %v160_v41 = vpop.f32.mrf.mxu0 }
  0xaa   :  { %v2153_v50 = vpop.f32.mrf.mxu2 }
  0xab   :  { %v2155_v51 = vpop.f32.mrf.mxu3 }
  0xb0   :  { %v162_v63 = vpop.f32.mrf.mxu0 }
  0xb2   :  { %v2175_v59 = vpop.f32.mrf.mxu2 }
  0xb3   :  { %v2183_v0 = vpop.f32.mrf.mxu3 }
  0xb7   :  { %1555 = vmatmul.msk.bf16.gmra.mxu2 %vm304_vm1, %v1763_v1 }
  0xb8   :  { %1563 = vmatmul.msk.bf16.gmra.mxu3 %vm304_vm1, %v1763_v1 }
  0xba   :  { %v2202_v11 = vpop.f32.mrf.mxu2 }
  0xbb   :  { %v2213_v15 = vpop.f32.mrf.mxu3 }
  0xc2   :  { %v2221_v28 = vpop.f32.mrf.mxu2 }
  0xc3   :  { %v2223_v29 = vpop.f32.mrf.mxu3 }
  0xca   :  { %v338_v32 = vpop.f32.mrf.mxu2 }
  0xcb   :  { %v339_v33 = vadd.f32 %v338_v32, %v155_v20  ;;  %v387_v34 = vpop.f32.mrf.mxu3  ;;  %v214_v32 = vpop.f32.mrf.mxu1 }
  0xcc   :  { %v388_v36 = vadd.f32 %v387_v34, %v204_v22 }
  0xce   :  { %v427_v38 = vpack.c.bf16 %v388_v36, %v339_v33 }
  0xd0   :  { %v454_v46 = vunpack.c.l.bf16 %v427_v38  ;;  %v455_v52 = vunpack.c.h.bf16 %v427_v38  ;;  %v1816_v38 = vld [vmem:[%s2453_s7 + $0x30] sm:$0xff] }
  0xd1   :  { %1326 = vmatpush.bf16.msra.mxu0 %v1816_v38 }
  0xd2   :  { %v340_v45 = vpop.f32.mrf.mxu2  ;;  %v488_v56 = vadd.f32 %v2225_v49, %v454_v46  ;;  %v489_v60 = vadd.f32 %v2227_v54, %v455_v52 }
  0xd3   :  { %v341_v47 = vadd.f32 %v340_v45, %v157_v30  ;;  %v389_v48 = vpop.f32.mrf.mxu3  ;;  %v165_v30 = vpop.f32.mrf.mxu0 }
  0xd4   :  { %v390_v53 = vadd.f32 %v389_v48, %v206_v31  ;;  %v568_v9 = vmax.f32 %v488_v56, 0.0  ;;  %v569_v13 = vmax.f32 %v489_v60, 0.0  ;;  %v216_v60 = vpop.f32.mrf.mxu1 }
  0xd6   :  { %v428_v55 = vpack.c.bf16 %v390_v53, %v341_v47 }
  0xd8   :  { %v456_v57 = vunpack.c.l.bf16 %v428_v55  ;;  %v457_v58 = vunpack.c.h.bf16 %v428_v55 }
  0xda   :  { %v343_v1 = vpop.f32.mrf.mxu2  ;;  %v490_v2 = vadd.f32 %v2225_v49, %v456_v57  ;;  %v491_v5 = vadd.f32 %v2227_v54, %v457_v58 }
  0xdb   :  { %v344_v7 = vadd.f32 %v343_v1, %v160_v41  ;;  %v392_v8 = vpop.f32.mrf.mxu3  ;;  %v167_v56 = vpop.f32.mrf.mxu0 }
  0xdc   :  { %v393_v10 = vadd.f32 %v392_v8, %v209_v44  ;;  %v570_v12 = vmax.f32 %v490_v2, 0.0  ;;  %v571_v14 = vmax.f32 %v491_v5, 0.0 }
  0xde   :  { %v600_v16 = vpack.c.bf16 %v570_v12, %v568_v9  ;;  %v601_v18 = vpack.c.bf16 %v571_v14, %v569_v13  ;;  %v429_v20 = vpack.c.bf16 %v393_v10, %v344_v7  ;;  %v1815_v14 = vld [vmem:[%s2453_s7 + $0x28] sm:$0xff] }
  0xdf   :  { %1327 = vmatpush.bf16.msra.mxu0 %v1815_v14 }
  0xe0   :  { %816 = vmatmul.bf16.vlgmr.msrb.gmra.mxu0 %v600_v16  ;;  %865 = vmatmul.bf16.vlgmr.msrb.gmra.mxu1 %v601_v18  ;;  %v458_v22 = vunpack.c.l.bf16 %v429_v20  ;;  %v459_v25 = vunpack.c.h.bf16 %v429_v20 }
  0xe1   :  { %914 = vmatmul.bf16.vlgmr.msra.gmra.mxu2 %v600_v16  ;;  %963 = vmatmul.bf16.vlgmr.msra.gmra.mxu3 %v601_v18  ;;  %v1823_v16 = vld [vmem:[%s2453_s7 + $0x68] sm:$0xff]  ;;  %v219_v18 = vpop.f32.mrf.mxu1 }
  0xe2   :  { %v345_v21 = vpop.f32.mrf.mxu2  ;;  %v492_v34 = vadd.f32 %v2225_v49, %v458_v22  ;;  %v493_v37 = vadd.f32 %v2227_v54, %v459_v25  ;;  %1376 = vmatpush.bf16.msra.mxu1 %v1823_v16 }
  0xe3   :  { %v346_v23 = vadd.f32 %v345_v21, %v162_v63  ;;  %v394_v24 = vpop.f32.mrf.mxu3  ;;  %v170_v9 = vpop.f32.mrf.mxu0 }
  0xe4   :  { %v395_v31 = vadd.f32 %v394_v24, %v211_v6  ;;  %v572_v47 = vmax.f32 %v492_v34, 0.0  ;;  %v573_v53 = vmax.f32 %v493_v37, 0.0 }
  0xe6   :  { %v430_v33 = vpack.c.bf16 %v395_v31, %v346_v23 }
  0xe8   :  { %v460_v35 = vunpack.c.l.bf16 %v430_v33  ;;  %v461_v36 = vunpack.c.h.bf16 %v430_v33 }
  0xe9   :  { %v221_v39 = vpop.f32.mrf.mxu1 }
  0xea   :  { %v348_v41 = vpop.f32.mrf.mxu2  ;;  %v494_v43 = vadd.f32 %v2225_v49, %v460_v35  ;;  %v495_v44 = vadd.f32 %v2227_v54, %v461_v36 }
  0xeb   :  { %v349_v45 = vadd.f32 %v348_v41, %v165_v30  ;;  %v397_v46 = vpop.f32.mrf.mxu3  ;;  %v172_v37 = vpop.f32.mrf.mxu0 }
  0xec   :  { %v398_v48 = vadd.f32 %v397_v46, %v214_v32  ;;  %v574_v52 = vmax.f32 %v494_v43, 0.0  ;;  %v575_v55 = vmax.f32 %v495_v44, 0.0 }
  0xee   :  { %v602_v57 = vpack.c.bf16 %v574_v52, %v572_v47  ;;  %v603_v58 = vpack.c.bf16 %v575_v55, %v573_v53  ;;  %v431_v61 = vpack.c.bf16 %v398_v48, %v349_v45 }
  0xf0   :  { %821 = vmatmul.bf16.gmra.mxu0 %v602_v57  ;;  %870 = vmatmul.bf16.gmra.mxu1 %v603_v58  ;;  %v462_v63 = vunpack.c.l.bf16 %v431_v61  ;;  %v463_v5 = vunpack.c.h.bf16 %v431_v61 }
  0xf1   :  { %919 = vmatmul.bf16.gmra.mxu2 %v602_v57  ;;  %968 = vmatmul.bf16.gmra.mxu3 %v603_v58  ;;  %v1822_v57 = vld [vmem:[%s2453_s7 + $0x60] sm:$0xff] }
  0xf2   :  { %v350_v62 = vpop.f32.mrf.mxu2  ;;  %v496_v8 = vadd.f32 %v2225_v49, %v462_v63  ;;  %v497_v13 = vadd.f32 %v2227_v54, %v463_v5  ;;  %1377 = vmatpush.bf16.msra.mxu1 %v1822_v57  ;;  %v1820_v57 = vld [vmem:[%s2453_s7 + $0x50] sm:$0xff] }
  0xf3   :  { %v351_v1 = vadd.f32 %v350_v62, %v167_v56  ;;  %v399_v2 = vpop.f32.mrf.mxu3  ;;  %v1814_v56 = vld [vmem:[%s2453_s7 + $0x20] sm:$0xff] }
  0xf4   :  { %v400_v6 = vadd.f32 %v399_v2, %v216_v60  ;;  %v576_v25 = vmax.f32 %v496_v8, 0.0  ;;  %v577_v32 = vmax.f32 %v497_v13, 0.0  ;;  %1328 = vmatpush.bf16.msra.mxu0 %v1814_v56  ;;  %v1812_v56 = vld [vmem:[%s2453_s7 + $0x10] sm:$0xff] }
  0xf6   :  { %v432_v7 = vpack.c.bf16 %v400_v6, %v351_v1 }
  0xf8   :  { %v464_v10 = vunpack.c.l.bf16 %v432_v7  ;;  %v465_v12 = vunpack.c.h.bf16 %v432_v7 }
  0xfa   :  { %v353_v20 = vpop.f32.mrf.mxu2  ;;  %v498_v21 = vadd.f32 %v2225_v49, %v464_v10  ;;  %v499_v22 = vadd.f32 %v2227_v54, %v465_v12 }
  0xfb   :  { %v354_v23 = vadd.f32 %v353_v20, %v170_v9  ;;  %v402_v24 = vpop.f32.mrf.mxu3 }
  0xfc   :  { %v403_v30 = vadd.f32 %v402_v24, %v219_v18  ;;  %v578_v31 = vmax.f32 %v498_v21, 0.0  ;;  %v579_v33 = vmax.f32 %v499_v22, 0.0  ;;  %v1813_v24 = vld [vmem:[%s2453_s7 + $0x18] sm:$0xff] }
  0xfd   :  { %1329 = vmatpush.bf16.msra.mxu0 %v1813_v24 }
  0xfe   :  { %v604_v34 = vpack.c.bf16 %v578_v31, %v576_v25  ;;  %v605_v35 = vpack.c.bf16 %v579_v33, %v577_v32  ;;  %v433_v36 = vpack.c.bf16 %v403_v30, %v354_v23  ;;  %v1821_v25 = vld [vmem:[%s2453_s7 + $0x58] sm:$0xff] }
  0xff   :  { %1378 = vmatpush.bf16.msra.mxu1 %v1821_v25 }
 0x100   :  { %826 = vmatmul.bf16.gmra.mxu0 %v604_v34  ;;  %875 = vmatmul.bf16.gmra.mxu1 %v605_v35  ;;  %v466_v41 = vunpack.c.l.bf16 %v433_v36  ;;  %v467_v45 = vunpack.c.h.bf16 %v433_v36 }
 0x101   :  { %924 = vmatmul.bf16.gmra.mxu2 %v604_v34  ;;  %973 = vmatmul.bf16.gmra.mxu3 %v605_v35 }
 0x102   :  { %v355_v38 = vpop.f32.mrf.mxu2  ;;  %v500_v48 = vadd.f32 %v2225_v49, %v466_v41  ;;  %v501_v55 = vadd.f32 %v2227_v54, %v467_v45  ;;  %1330 = vmatpush.bf16.msra.mxu0 %v1812_v56  ;;  %v1023_v56 = vld [vmem:[#allocation1] sm:$0xff] }
 0x103   :  { %v356_v43 = vadd.f32 %v355_v38, %v172_v37  ;;  %v404_v44 = vpop.f32.mrf.mxu3  ;;  %1379 = vmatpush.bf16.msra.mxu1 %v1820_v57  ;;  %v1024_v57 = vld [vmem:[#allocation1 + $0x9] sm:$0xff] }
 0x104   :  { %v405_v46 = vadd.f32 %v404_v44, %v221_v39  ;;  %v580_v1 = vmax.f32 %v500_v48, 0.0  ;;  %v581_v6 = vmax.f32 %v501_v55, 0.0 }
 0x106   :  { %v434_v47 = vpack.c.bf16 %v405_v46, %v356_v43 }
 0x108   :  { %v468_v52 = vunpack.c.l.bf16 %v434_v47  ;;  %v469_v53 = vunpack.c.h.bf16 %v434_v47 }
 0x10a   :  { %v358_v58 = vpop.f32.mrf.mxu2  ;;  %v502_v60 = vadd.f32 %v2225_v49, %v468_v52  ;;  %v503_v61 = vadd.f32 %v2227_v54, %v469_v53 }
 0x10b   :  { %v359_v62 = vadd.f32 %v358_v58, %v2052_v3  ;;  %v407_v63 = vpop.f32.mrf.mxu3 }
 0x10c   :  { %v408_v2 = vadd.f32 %v407_v63, %v2054_v4  ;;  %v582_v5 = vmax.f32 %v502_v60, 0.0  ;;  %v583_v7 = vmax.f32 %v503_v61, 0.0 }
 0x10e   :  { %v606_v8 = vpack.c.bf16 %v582_v5, %v580_v1  ;;  %v607_v9 = vpack.c.bf16 %v583_v7, %v581_v6  ;;  %v435_v10 = vpack.c.bf16 %v408_v2, %v359_v62 }
 0x110   :  { %831 = vmatmul.bf16.gmra.mxu0 %v606_v8  ;;  %880 = vmatmul.bf16.gmra.mxu1 %v607_v9  ;;  %v470_v13 = vunpack.c.l.bf16 %v435_v10  ;;  %v471_v3 = vunpack.c.h.bf16 %v435_v10 }
 0x111   :  { %929 = vmatmul.bf16.gmra.mxu2 %v606_v8  ;;  %978 = vmatmul.bf16.gmra.mxu3 %v607_v9  ;;  %v1811_v9 = vld [vmem:[%s2453_s7 + $0x8] sm:$0xff] }
 0x112   :  { %v360_v12 = vpop.f32.mrf.mxu2  ;;  %v504_v4 = vadd.f32 %v2225_v49, %v470_v13  ;;  %v505_v23 = vadd.f32 %v2227_v54, %v471_v3  ;;  %1331 = vmatpush.bf16.msra.mxu0 %v1811_v9 }
 0x113   :  { %v361_v14 = vadd.f32 %v360_v12, %v2080_v17  ;;  %v409_v16 = vpop.f32.mrf.mxu3 }
 0x114   :  { %v410_v18 = vadd.f32 %v409_v16, %v2085_v19  ;;  %v584_v33 = vmax.f32 %v504_v4, 0.0  ;;  %v585_v36 = vmax.f32 %v505_v23, 0.0 }
 0x116   :  { %v436_v20 = vpack.c.bf16 %v410_v18, %v361_v14 }
 0x118   :  { %v472_v21 = vunpack.c.l.bf16 %v436_v20  ;;  %v473_v22 = vunpack.c.h.bf16 %v436_v20 }
 0x11a   :  { %v363_v17 = vpop.f32.mrf.mxu2  ;;  %v506_v30 = vadd.f32 %v2225_v49, %v472_v21  ;;  %v507_v19 = vadd.f32 %v2227_v54, %v473_v22 }
 0x11b   :  { %v364_v31 = vadd.f32 %v363_v17, %v2101_v26  ;;  %v412_v32 = vpop.f32.mrf.mxu3 }
 0x11c   :  { %v413_v34 = vadd.f32 %v412_v32, %v2103_v27  ;;  %v586_v35 = vmax.f32 %v506_v30, 0.0  ;;  %v587_v37 = vmax.f32 %v507_v19, 0.0 }
 0x11e   :  { %v608_v38 = vpack.c.bf16 %v586_v35, %v584_v33  ;;  %v609_v39 = vpack.c.bf16 %v587_v37, %v585_v36  ;;  %v437_v41 = vpack.c.bf16 %v413_v34, %v364_v31 }
 0x120   :  { %836 = vmatmul.bf16.gmra.mxu0 %v608_v38  ;;  %885 = vmatmul.bf16.gmra.mxu1 %v609_v39  ;;  %v474_v44 = vunpack.c.l.bf16 %v437_v41  ;;  %v475_v26 = vunpack.c.h.bf16 %v437_v41 }
 0x121   :  { %934 = vmatmul.bf16.gmra.mxu2 %v608_v38  ;;  %983 = vmatmul.bf16.gmra.mxu3 %v609_v39 }
 0x122   :  { %v365_v43 = vpop.f32.mrf.mxu2  ;;  %v508_v27 = vadd.f32 %v2225_v49, %v474_v44  ;;  %v509_v55 = vadd.f32 %v2227_v54, %v475_v26 }
 0x123   :  { %v366_v45 = vadd.f32 %v365_v43, %v2129_v40  ;;  %v414_v46 = vpop.f32.mrf.mxu3 }
 0x124   :  { %v415_v47 = vadd.f32 %v414_v46, %v2134_v42  ;;  %v588_v62 = vmax.f32 %v508_v27, 0.0  ;;  %v589_v2 = vmax.f32 %v509_v55, 0.0 }
 0x126   :  { %v438_v48 = vpack.c.bf16 %v415_v47, %v366_v45 }
 0x128   :  { %v476_v52 = vunpack.c.l.bf16 %v438_v48  ;;  %v477_v53 = vunpack.c.h.bf16 %v438_v48 }
 0x12a   :  { %v368_v40 = vpop.f32.mrf.mxu2  ;;  %v510_v58 = vadd.f32 %v2225_v49, %v476_v52  ;;  %v511_v42 = vadd.f32 %v2227_v54, %v477_v53  ;;  %v1810_v52 = vld [vmem:[%s2453_s7] sm:$0xff] }
 0x12b   :  { %v369_v60 = vadd.f32 %v368_v40, %v2153_v50  ;;  %v417_v61 = vpop.f32.mrf.mxu3  ;;  %v1819_v50 = vld [vmem:[%s2453_s7 + $0x48] sm:$0xff]  ;;  %1332 = vmatpush.bf16.msra.mxu0 %v1810_v52 }
 0x12c   :  { %v418_v63 = vadd.f32 %v417_v61, %v2155_v51  ;;  %v590_v1 = vmax.f32 %v510_v58, 0.0  ;;  %v591_v5 = vmax.f32 %v511_v42, 0.0  ;;  %1380 = vmatpush.bf16.msra.mxu1 %v1819_v50  ;;  %v1025_v42 = vpack.i.b16 %v1023_v56, %v1023_v56 }
 0x12d   :  { %v1028_v61 = vpack.i.b16 %v1024_v57, %v1024_v57 }
 0x12e   :  { %v610_v6 = vpack.c.bf16 %v590_v1, %v588_v62  ;;  %v611_v7 = vpack.c.bf16 %v591_v5, %v589_v2  ;;  %v439_v8 = vpack.c.bf16 %v418_v63, %v369_v60  ;;  %v1027_v5 = vperm.slane %v1025_v42, 0 }
 0x130   :  { %841 = vmatmul.bf16.gmra.mxu0 %v610_v6  ;;  %890 = vmatmul.bf16.gmra.mxu1 %v611_v7  ;;  %v478_v51 = vunpack.c.l.bf16 %v439_v8  ;;  %v479_v12 = vunpack.c.h.bf16 %v439_v8  ;;  %v2325_v8 = vunpack.c.l.bf16 %v1027_v5 }
 0x131   :  { %939 = vmatmul.bf16.gmra.mxu2 %v610_v6  ;;  %988 = vmatmul.bf16.gmra.mxu3 %v611_v7  ;;  %v1030_v6 = vperm.slane %v1028_v61, 0 }
 0x132   :  { %v370_v10 = vpop.f32.mrf.mxu2  ;;  %v512_v18 = vadd.f32 %v2225_v49, %v478_v51  ;;  %v513_v20 = vadd.f32 %v2227_v54, %v479_v12 }
 0x133   :  { %v371_v13 = vadd.f32 %v370_v10, %v2175_v59  ;;  %v419_v14 = vpop.f32.mrf.mxu3  ;;  %v2327_v51 = vunpack.c.l.bf16 %v1030_v6 }
 0x134   :  { %v420_v16 = vadd.f32 %v419_v14, %v2183_v0  ;;  %v592_v17 = vmax.f32 %v512_v18, 0.0  ;;  %v593_v59 = vmax.f32 %v513_v20, 0.0 }
 0x136   :  { %v440_v3 = vpack.c.bf16 %v420_v16, %v371_v13 }
 0x138   :  { %v480_v4 = vunpack.c.l.bf16 %v440_v3  ;;  %v481_v21 = vunpack.c.h.bf16 %v440_v3 }
 0x13a   :  { %v373_v22 = vpop.f32.mrf.mxu2  ;;  %v514_v23 = vadd.f32 %v2225_v49, %v480_v4  ;;  %v515_v24 = vadd.f32 %v2227_v54, %v481_v21 }
 0x13b   :  { %v422_v25 = vpop.f32.mrf.mxu3  ;;  %v374_v30 = vadd.f32 %v373_v22, %v2202_v11 }
 0x13c   :  { %v423_v19 = vadd.f32 %v422_v25, %v2213_v15  ;;  %v594_v0 = vmax.f32 %v514_v23, 0.0  ;;  %v595_v31 = vmax.f32 %v515_v24, 0.0 }
 0x13e   :  { %v612_v32 = vpack.c.bf16 %v594_v0, %v592_v17  ;;  %v613_v33 = vpack.c.bf16 %v595_v31, %v593_v59  ;;  %v441_v34 = vpack.c.bf16 %v423_v19, %v374_v30 }
 0x140   :  { %846 = vmatmul.bf16.gmra.mxu0 %v612_v32  ;;  %895 = vmatmul.bf16.gmra.mxu1 %v613_v33  ;;  %v482_v38 = vunpack.c.l.bf16 %v441_v34  ;;  %v483_v39 = vunpack.c.h.bf16 %v441_v34 }
 0x141   :  { %944 = vmatmul.bf16.gmra.mxu2 %v612_v32  ;;  %993 = vmatmul.bf16.gmra.mxu3 %v613_v33 }
 0x142   :  { %v375_v35 = vpop.f32.mrf.mxu2  ;;  %v516_v44 = vadd.f32 %v2225_v49, %v482_v38  ;;  %v517_v45 = vadd.f32 %v2227_v54, %v483_v39 }
 0x143   :  { %v376_v36 = vadd.f32 %v375_v35, %v2221_v28  ;;  %v424_v37 = vpop.f32.mrf.mxu3 }
 0x144   :  { %v425_v41 = vadd.f32 %v424_v37, %v2223_v29  ;;  %v596_v47 = vmax.f32 %v516_v44, 0.0  ;;  %v597_v27 = vmax.f32 %v517_v45, 0.0  ;;  %v1818_v29 = vld [vmem:[%s2453_s7 + $0x40] sm:$0xff] }
 0x145   :  { %1381 = vmatpush.bf16.msra.mxu1 %v1818_v29 }
 0x146   :  { %v442_v11 = vpack.c.bf16 %v425_v41, %v376_v36 }
 0x148   :  { %v484_v43 = vunpack.c.l.bf16 %v442_v11  ;;  %v485_v15 = vunpack.c.h.bf16 %v442_v11 }
 0x14a   :  { %v518_v46 = vadd.f32 %v2225_v49, %v484_v43  ;;  %v519_v26 = vadd.f32 %v2227_v54, %v485_v15 }
 0x14c   :  { %v598_v48 = vmax.f32 %v518_v46, 0.0  ;;  %v599_v28 = vmax.f32 %v519_v26, 0.0 }
 0x14e   :  { %v614_v53 = vpack.c.bf16 %v598_v48, %v596_v47  ;;  %v615_v55 = vpack.c.bf16 %v599_v28, %v597_v27 }
 0x150   :  { %851 = vmatmul.bf16.gmra.mxu0 %v614_v53  ;;  %900 = vmatmul.bf16.gmra.mxu1 %v615_v55 }
 0x151   :  { %949 = vmatmul.bf16.gmra.mxu2 %v614_v53  ;;  %998 = vmatmul.bf16.gmra.mxu3 %v615_v55 }
 0x15d   :  { %v817_v49 = vpop.f32.mrf.mxu0  ;;  %v866_v54 = vpop.f32.mrf.mxu1 }
 0x15e   :  { %v867_v1 = vadd.f32 %v866_v54, %v817_v49 }
 0x164   :  { %v915_v40 = vpop.f32.mrf.mxu2  ;;  %v964_v58 = vpop.f32.mrf.mxu3 }
 0x165   :  { %v965_v60 = vadd.f32 %v964_v58, %v915_v40  ;;  %v819_v62 = vpop.f32.mrf.mxu0  ;;  %v868_v63 = vpop.f32.mrf.mxu1 }
 0x166   :  { %v869_v12 = vadd.f32 %v868_v63, %v819_v62 }
 0x167   :  { %v1004_v2 = vpack.c.bf16 %v965_v60, %v867_v1 }
 0x169   :  { %v1031_v7 = vunpack.c.l.bf16 %v1004_v2  ;;  %v1032_v10 = vunpack.c.h.bf16 %v1004_v2 }
 0x16b   :  { %v1065_v18 = vadd.f32 %v2325_v8, %v1031_v7  ;;  %v1066_v20 = vadd.f32 %v2327_v51, %v1032_v10 }
 0x16c   :  { %v917_v9 = vpop.f32.mrf.mxu2  ;;  %v966_v50 = vpop.f32.mrf.mxu3 }
 0x16d   :  { %v967_v13 = vadd.f32 %v966_v50, %v917_v9  ;;  %v822_v14 = vpop.f32.mrf.mxu0  ;;  %v871_v16 = vpop.f32.mrf.mxu1  ;;  %v1145_v24 = vmax.f32 %v1065_v18, 0.0  ;;  %v1146_v59 = vmax.f32 %v1066_v20, 0.0 }
 0x16e   :  { %v872_v33 = vadd.f32 %v871_v16, %v822_v14 }
 0x16f   :  { %v1005_v3 = vpack.c.bf16 %v967_v13, %v869_v12 }
 0x171   :  { %v1033_v4 = vunpack.c.l.bf16 %v1005_v3  ;;  %v1034_v21 = vunpack.c.h.bf16 %v1005_v3 }
 0x173   :  { %v1067_v22 = vadd.f32 %v2325_v8, %v1033_v4  ;;  %v1068_v23 = vadd.f32 %v2327_v51, %v1034_v21 }
 0x174   :  { %v920_v25 = vpop.f32.mrf.mxu2  ;;  %v969_v17 = vpop.f32.mrf.mxu3 }
 0x175   :  { %v1147_v30 = vmax.f32 %v1067_v22, 0.0  ;;  %v1148_v19 = vmax.f32 %v1068_v23, 0.0  ;;  %v970_v0 = vadd.f32 %v969_v17, %v920_v25  ;;  %v824_v31 = vpop.f32.mrf.mxu0  ;;  %v873_v32 = vpop.f32.mrf.mxu1 }
 0x176   :  { %v874_v11 = vadd.f32 %v873_v32, %v824_v31 }
 0x177   :  { %v1177_v34 = vpack.c.bf16 %v1147_v30, %v1145_v24  ;;  %v1178_v35 = vpack.c.bf16 %v1148_v19, %v1146_v59  ;;  %v1006_v36 = vpack.c.bf16 %v970_v0, %v872_v33 }
 0x179   :  { %1333 = vmatmul.bf16.vlgmr.msra.gmra.mxu0 %v1177_v34  ;;  %1382 = vmatmul.bf16.vlgmr.msra.gmra.mxu1 %v1178_v35  ;;  %v1035_v37 = vunpack.c.l.bf16 %v1006_v36  ;;  %v1036_v41 = vunpack.c.h.bf16 %v1006_v36 }
 0x17b   :  { %v1069_v46 = vadd.f32 %v2325_v8, %v1035_v37  ;;  %v1070_v48 = vadd.f32 %v2327_v51, %v1036_v41 }
 0x17c   :  { %v922_v38 = vpop.f32.mrf.mxu2  ;;  %v971_v39 = vpop.f32.mrf.mxu3 }
 0x17d   :  { %v972_v43 = vadd.f32 %v971_v39, %v922_v38  ;;  %v827_v15 = vpop.f32.mrf.mxu0  ;;  %v876_v44 = vpop.f32.mrf.mxu1  ;;  %v1149_v53 = vmax.f32 %v1069_v46, 0.0  ;;  %v1150_v57 = vmax.f32 %v1070_v48, 0.0 }
 0x17e   :  { %v877_v58 = vadd.f32 %v876_v44, %v827_v15 }
 0x17f   :  { %v1007_v45 = vpack.c.bf16 %v972_v43, %v874_v11 }
 0x181   :  { %v1037_v26 = vunpack.c.l.bf16 %v1007_v45  ;;  %v1038_v47 = vunpack.c.h.bf16 %v1007_v45 }
 0x183   :  { %v1071_v27 = vadd.f32 %v2325_v8, %v1037_v26  ;;  %v1072_v28 = vadd.f32 %v2327_v51, %v1038_v47 }
 0x184   :  { %v925_v52 = vpop.f32.mrf.mxu2  ;;  %v974_v29 = vpop.f32.mrf.mxu3 }
 0x185   :  { %v975_v55 = vadd.f32 %v974_v29, %v925_v52  ;;  %v829_v49 = vpop.f32.mrf.mxu0  ;;  %v878_v54 = vpop.f32.mrf.mxu1  ;;  %v1151_v56 = vmax.f32 %v1071_v27, 0.0  ;;  %v1152_v40 = vmax.f32 %v1072_v28, 0.0 }
 0x186   :  { %v879_v5 = vadd.f32 %v878_v54, %v829_v49 }
 0x187   :  { %v1179_v42 = vpack.c.bf16 %v1151_v56, %v1149_v53  ;;  %v1180_v60 = vpack.c.bf16 %v1152_v40, %v1150_v57  ;;  %v1008_v61 = vpack.c.bf16 %v975_v55, %v877_v58 }
 0x189   :  { %1338 = vmatmul.bf16.gmra.mxu0 %v1179_v42  ;;  %1387 = vmatmul.bf16.gmra.mxu1 %v1180_v60  ;;  %v1039_v62 = vunpack.c.l.bf16 %v1008_v61  ;;  %v1040_v2 = vunpack.c.h.bf16 %v1008_v61 }
 0x18b   :  { %v1073_v10 = vadd.f32 %v2325_v8, %v1039_v62  ;;  %v1074_v14 = vadd.f32 %v2327_v51, %v1040_v2 }
 0x18c   :  { %v927_v63 = vpop.f32.mrf.mxu2  ;;  %v976_v1 = vpop.f32.mrf.mxu3 }
 0x18d   :  { %v977_v6 = vadd.f32 %v976_v1, %v927_v63  ;;  %v832_v7 = vpop.f32.mrf.mxu0  ;;  %v881_v9 = vpop.f32.mrf.mxu1  ;;  %v1153_v4 = vmax.f32 %v1073_v10, 0.0  ;;  %v1154_v25 = vmax.f32 %v1074_v14, 0.0 }
 0x18e   :  { %v882_v59 = vadd.f32 %v881_v9, %v832_v7 }
 0x18f   :  { %v1009_v50 = vpack.c.bf16 %v977_v6, %v879_v5 }
 0x191   :  { %v1041_v12 = vunpack.c.l.bf16 %v1009_v50  ;;  %v1042_v13 = vunpack.c.h.bf16 %v1009_v50 }
 0x193   :  { %v1075_v16 = vadd.f32 %v2325_v8, %v1041_v12  ;;  %v1076_v3 = vadd.f32 %v2327_v51, %v1042_v13 }
 0x194   :  { %v930_v18 = vpop.f32.mrf.mxu2  ;;  %v979_v20 = vpop.f32.mrf.mxu3 }
 0x195   :  { %v980_v21 = vadd.f32 %v979_v20, %v930_v18  ;;  %v834_v22 = vpop.f32.mrf.mxu0  ;;  %v883_v23 = vpop.f32.mrf.mxu1  ;;  %v1155_v24 = vmax.f32 %v1075_v16, 0.0  ;;  %v1156_v17 = vmax.f32 %v1076_v3, 0.0 }
 0x196   :  { %v884_v35 = vadd.f32 %v883_v23, %v834_v22 }
 0x197   :  { %v1181_v30 = vpack.c.bf16 %v1155_v24, %v1153_v4  ;;  %v1182_v19 = vpack.c.bf16 %v1156_v17, %v1154_v25  ;;  %v1010_v0 = vpack.c.bf16 %v980_v21, %v882_v59 }
 0x199   :  { %1343 = vmatmul.bf16.gmra.mxu0 %v1181_v30  ;;  %1392 = vmatmul.bf16.gmra.mxu1 %v1182_v19  ;;  %v1043_v31 = vunpack.c.l.bf16 %v1010_v0  ;;  %v1044_v34 = vunpack.c.h.bf16 %v1010_v0 }
 0x19b   :  { %v1077_v41 = vadd.f32 %v2325_v8, %v1043_v31  ;;  %v1078_v15 = vadd.f32 %v2327_v51, %v1044_v34 }
 0x19c   :  { %v932_v32 = vpop.f32.mrf.mxu2  ;;  %v981_v33 = vpop.f32.mrf.mxu3 }
 0x19d   :  { %v982_v36 = vadd.f32 %v981_v33, %v932_v32  ;;  %v837_v37 = vpop.f32.mrf.mxu0  ;;  %v886_v38 = vpop.f32.mrf.mxu1  ;;  %v1157_v47 = vmax.f32 %v1077_v41, 0.0  ;;  %v1158_v29 = vmax.f32 %v1078_v15, 0.0 }
 0x19e   :  { %v887_v55 = vadd.f32 %v886_v38, %v837_v37 }
 0x19f   :  { %v1011_v39 = vpack.c.bf16 %v982_v36, %v884_v35 }
 0x1a1   :  { %v1045_v11 = vunpack.c.l.bf16 %v1011_v39  ;;  %v1046_v43 = vunpack.c.h.bf16 %v1011_v39 }
 0x1a3   :  { %v1079_v44 = vadd.f32 %v2325_v8, %v1045_v11  ;;  %v1080_v45 = vadd.f32 %v2327_v51, %v1046_v43 }
 0x1a4   :  { %v935_v46 = vpop.f32.mrf.mxu2  ;;  %v984_v26 = vpop.f32.mrf.mxu3 }
 0x1a5   :  { %v985_v48 = vadd.f32 %v984_v26, %v935_v46  ;;  %v839_v27 = vpop.f32.mrf.mxu0  ;;  %v888_v28 = vpop.f32.mrf.mxu1  ;;  %v1159_v52 = vmax.f32 %v1079_v44, 0.0  ;;  %v1160_v53 = vmax.f32 %v1080_v45, 0.0 }
 0x1a6   :  { %v889_v60 = vadd.f32 %v888_v28, %v839_v27 }
 0x1a7   :  { %v1183_v49 = vpack.c.bf16 %v1159_v52, %v1157_v47  ;;  %v1184_v54 = vpack.c.bf16 %v1160_v53, %v1158_v29  ;;  %v1012_v56 = vpack.c.bf16 %v985_v48, %v887_v55 }
 0x1a9   :  { %1348 = vmatmul.bf16.gmra.mxu0 %v1183_v49  ;;  %1397 = vmatmul.bf16.gmra.mxu1 %v1184_v54  ;;  %v1047_v57 = vunpack.c.l.bf16 %v1012_v56  ;;  %v1048_v42 = vunpack.c.h.bf16 %v1012_v56 }
 0x1ab   :  { %v1081_v2 = vadd.f32 %v2325_v8, %v1047_v57  ;;  %v1082_v7 = vadd.f32 %v2327_v51, %v1048_v42 }
 0x1ac   :  { %v937_v40 = vpop.f32.mrf.mxu2  ;;  %v986_v58 = vpop.f32.mrf.mxu3 }
 0x1ad   :  { %v987_v61 = vadd.f32 %v986_v58, %v937_v40  ;;  %v842_v62 = vpop.f32.mrf.mxu0  ;;  %v891_v63 = vpop.f32.mrf.mxu1  ;;  %v1161_v13 = vmax.f32 %v1081_v2, 0.0  ;;  %v1162_v20 = vmax.f32 %v1082_v7, 0.0 }
 0x1ae   :  { %v892_v21 = vadd.f32 %v891_v63, %v842_v62 }
 0x1af   :  { %v1013_v1 = vpack.c.bf16 %v987_v61, %v889_v60 }
 0x1b1   :  { %v1049_v5 = vunpack.c.l.bf16 %v1013_v1  ;;  %v1050_v6 = vunpack.c.h.bf16 %v1013_v1 }
 0x1b3   :  { %v1083_v9 = vadd.f32 %v2325_v8, %v1049_v5  ;;  %v1084_v50 = vadd.f32 %v2327_v51, %v1050_v6 }
 0x1b4   :  { %v940_v10 = vpop.f32.mrf.mxu2  ;;  %v989_v12 = vpop.f32.mrf.mxu3 }
 0x1b5   :  { %v990_v14 = vadd.f32 %v989_v12, %v940_v10  ;;  %v844_v16 = vpop.f32.mrf.mxu0  ;;  %v893_v3 = vpop.f32.mrf.mxu1  ;;  %v1163_v18 = vmax.f32 %v1083_v9, 0.0  ;;  %v1164_v4 = vmax.f32 %v1084_v50, 0.0 }
 0x1b6   :  { %v894_v19 = vadd.f32 %v893_v3, %v844_v16 }
 0x1b7   :  { %v1185_v22 = vpack.c.bf16 %v1163_v18, %v1161_v13  ;;  %v1186_v23 = vpack.c.bf16 %v1164_v4, %v1162_v20  ;;  %v1014_v24 = vpack.c.bf16 %v990_v14, %v892_v21 }
 0x1b9   :  { %1353 = vmatmul.bf16.gmra.mxu0 %v1185_v22  ;;  %1402 = vmatmul.bf16.gmra.mxu1 %v1186_v23  ;;  %v1051_v25 = vunpack.c.l.bf16 %v1014_v24  ;;  %v1052_v30 = vunpack.c.h.bf16 %v1014_v24 }
 0x1bb   :  { %v1085_v34 = vadd.f32 %v2325_v8, %v1051_v25  ;;  %v1086_v37 = vadd.f32 %v2327_v51, %v1052_v30 }
 0x1bc   :  { %v942_v17 = vpop.f32.mrf.mxu2  ;;  %v991_v59 = vpop.f32.mrf.mxu3 }
 0x1bd   :  { %v992_v0 = vadd.f32 %v991_v59, %v942_v17  ;;  %v847_v31 = vpop.f32.mrf.mxu0  ;;  %v896_v32 = vpop.f32.mrf.mxu1  ;;  %v1165_v43 = vmax.f32 %v1085_v34, 0.0  ;;  %v1166_v45 = vmax.f32 %v1086_v37, 0.0 }
 0x1be   :  { %v897_v26 = vadd.f32 %v896_v32, %v847_v31 }
 0x1bf   :  { %v1015_v33 = vpack.c.bf16 %v992_v0, %v894_v19 }
 0x1c1   :  { %v1053_v35 = vunpack.c.l.bf16 %v1015_v33  ;;  %v1054_v36 = vunpack.c.h.bf16 %v1015_v33 }
 0x1c3   :  { %v1087_v38 = vadd.f32 %v2325_v8, %v1053_v35  ;;  %v1088_v39 = vadd.f32 %v2327_v51, %v1054_v36 }
 0x1c4   :  { %v945_v41 = vpop.f32.mrf.mxu2  ;;  %v994_v11 = vpop.f32.mrf.mxu3 }
 0x1c5   :  { %v995_v15 = vadd.f32 %v994_v11, %v945_v41  ;;  %v1167_v44 = vmax.f32 %v1087_v38, 0.0  ;;  %v1168_v46 = vmax.f32 %v1088_v39, 0.0  ;;  %v849_v47 = vpop.f32.mrf.mxu0  ;;  %v898_v48 = vpop.f32.mrf.mxu1  ;;  %v2364_v38 = vld [vmem:[%s2454_s8] ss:$0 sm:$0xff] }
 0x1c6   :  { %v899_v54 = vadd.f32 %v898_v48, %v849_v47 }
 0x1c7   :  { %v1187_v27 = vpack.c.bf16 %v1167_v44, %v1165_v43  ;;  %v1188_v28 = vpack.c.bf16 %v1168_v46, %v1166_v45  ;;  %v1016_v52 = vpack.c.bf16 %v995_v15, %v897_v26 }
 0x1c9   :  { %1358 = vmatmul.bf16.gmra.mxu0 %v1187_v27  ;;  %1407 = vmatmul.bf16.gmra.mxu1 %v1188_v28  ;;  %v1055_v29 = vunpack.c.l.bf16 %v1016_v52  ;;  %v1056_v49 = vunpack.c.h.bf16 %v1016_v52 }
 0x1cb   :  { %v1089_v42 = vadd.f32 %v2325_v8, %v1055_v29  ;;  %v1090_v62 = vadd.f32 %v2327_v51, %v1056_v49 }
 0x1cc   :  { %v947_v53 = vpop.f32.mrf.mxu2  ;;  %v996_v55 = vpop.f32.mrf.mxu3 }
 0x1cd   :  { %v997_v56 = vadd.f32 %v996_v55, %v947_v53  ;;  %v852_v40 = vpop.f32.mrf.mxu0  ;;  %v901_v58 = vpop.f32.mrf.mxu1  ;;  %v1169_v6 = vmax.f32 %v1089_v42, 0.0  ;;  %v1170_v50 = vmax.f32 %v1090_v62, 0.0 }
 0x1ce   :  { %v902_v12 = vadd.f32 %v901_v58, %v852_v40 }
 0x1cf   :  { %v1017_v57 = vpack.c.bf16 %v997_v56, %v899_v54 }
 0x1d1   :  { %v1057_v60 = vunpack.c.l.bf16 %v1017_v57  ;;  %v1058_v61 = vunpack.c.h.bf16 %v1017_v57 }
 0x1d3   :  { %v1091_v63 = vadd.f32 %v2325_v8, %v1057_v60  ;;  %v1092_v1 = vadd.f32 %v2327_v51, %v1058_v61 }
 0x1d4   :  { %v950_v2 = vpop.f32.mrf.mxu2  ;;  %v999_v5 = vpop.f32.mrf.mxu3 }
 0x1d5   :  { %v1000_v7 = vadd.f32 %v999_v5, %v950_v2  ;;  %v1171_v9 = vmax.f32 %v1091_v63, 0.0  ;;  %v1172_v10 = vmax.f32 %v1092_v1, 0.0  ;;  %v854_v3 = vpop.f32.mrf.mxu0  ;;  %v903_v18 = vpop.f32.mrf.mxu1 }
 0x1d6   :  { %v904_v23 = vadd.f32 %v903_v18, %v854_v3 }
 0x1d7   :  { %v1189_v13 = vpack.c.bf16 %v1171_v9, %v1169_v6  ;;  %v1190_v14 = vpack.c.bf16 %v1172_v10, %v1170_v50  ;;  %v1018_v16 = vpack.c.bf16 %v1000_v7, %v902_v12 }
 0x1d9   :  { %1363 = vmatmul.bf16.gmra.mxu0 %v1189_v13  ;;  %1412 = vmatmul.bf16.gmra.mxu1 %v1190_v14  ;;  %v1059_v21 = vunpack.c.l.bf16 %v1018_v16  ;;  %v1060_v22 = vunpack.c.h.bf16 %v1018_v16 }
 0x1db   :  { %v1093_v30 = vadd.f32 %v2325_v8, %v1059_v21  ;;  %v1094_v19 = vadd.f32 %v2327_v51, %v1060_v22 }
 0x1dc   :  { %v952_v20 = vpop.f32.mrf.mxu2  ;;  %v1001_v4 = vpop.f32.mrf.mxu3 }
 0x1dd   :  { %v1002_v24 = vadd.f32 %v1001_v4, %v952_v20  ;;  %v1173_v32 = vmax.f32 %v1093_v30, 0.0  ;;  %v1174_v34 = vmax.f32 %v1094_v19, 0.0 }
 0x1df   :  { %v1019_v25 = vpack.c.bf16 %v1002_v24, %v904_v23 }
 0x1e1   :  { %v1061_v17 = vunpack.c.l.bf16 %v1019_v25  ;;  %v1062_v59 = vunpack.c.h.bf16 %v1019_v25 }
 0x1e3   :  { %v1095_v0 = vadd.f32 %v2325_v8, %v1061_v17  ;;  %v1096_v31 = vadd.f32 %v2327_v51, %v1062_v59 }
 0x1e5   :  { %v1175_v33 = vmax.f32 %v1095_v0, 0.0  ;;  %v1176_v35 = vmax.f32 %v1096_v31, 0.0 }
 0x1e7   :  { %v1191_v36 = vpack.c.bf16 %v1175_v33, %v1173_v32  ;;  %v1192_v37 = vpack.c.bf16 %v1176_v35, %v1174_v34 }
 0x1e9   :  { %1368 = vmatmul.bf16.gmra.mxu0 %v1191_v36  ;;  %1417 = vmatmul.bf16.gmra.mxu1 %v1192_v37 }
 0x1f6   :  { %v1334_v39 = vpop.f32.mrf.mxu0  ;;  %v1383_v41 = vpop.f32.mrf.mxu1 }
 0x1f7   :  { %v1335_v11 = vadd.f32 %v2364_v38, %v1334_v39 }
 0x1f9   :  { %v1384_v8 = vadd.f32 %v1383_v41, %v1335_v11 }
 0x1fb   :  { %1424 = vst.msk [vmem:[%s2455_s9] sm:$0xff] %vm1423_vm2, %v1384_v8 }
 0x1fe   :  { %v1336_v51 = vpop.f32.mrf.mxu0  ;;  %v1385_v43 = vpop.f32.mrf.mxu1 }
 0x1ff   :  { %v1337_v15 = vadd.f32 %v2364_v38, %v1336_v51 }
 0x201   :  { %v1386_v44 = vadd.f32 %v1385_v43, %v1337_v15 }
 0x203   :  { %1425 = vst.msk [vmem:[%s2455_s9 + $0x8] sm:$0xff] %vm1423_vm2, %v1386_v44 }
 0x206   :  { %v1339_v45 = vpop.f32.mrf.mxu0  ;;  %v1388_v46 = vpop.f32.mrf.mxu1 }
 0x207   :  { %v1340_v26 = vadd.f32 %v2364_v38, %v1339_v45 }
 0x209   :  { %v1389_v47 = vadd.f32 %v1388_v46, %v1340_v26 }
 0x20b   :  { %1426 = vst.msk [vmem:[%s2455_s9 + $0x10] sm:$0xff] %vm1423_vm2, %v1389_v47 }
 0x20e   :  { %v1341_v48 = vpop.f32.mrf.mxu0  ;;  %v1390_v27 = vpop.f32.mrf.mxu1 }
 0x20f   :  { %v1342_v28 = vadd.f32 %v2364_v38, %v1341_v48 }
 0x211   :  { %v1391_v52 = vadd.f32 %v1390_v27, %v1342_v28 }
 0x213   :  { %1427 = vst.msk [vmem:[%s2455_s9 + $0x18] sm:$0xff] %vm1423_vm2, %v1391_v52 }
 0x216   :  { %v1344_v29 = vpop.f32.mrf.mxu0  ;;  %v1393_v53 = vpop.f32.mrf.mxu1 }
 0x217   :  { %v1345_v55 = vadd.f32 %v2364_v38, %v1344_v29 }
 0x219   :  { %v1394_v49 = vadd.f32 %v1393_v53, %v1345_v55 }
 0x21b   :  { %1428 = vst.msk [vmem:[%s2455_s9 + $0x20] sm:$0xff] %vm1423_vm2, %v1394_v49 }
 0x21e   :  { %v1346_v54 = vpop.f32.mrf.mxu0  ;;  %v1395_v56 = vpop.f32.mrf.mxu1 }
 0x21f   :  { %v1347_v57 = vadd.f32 %v2364_v38, %v1346_v54 }
 0x221   :  { %v1396_v40 = vadd.f32 %v1395_v56, %v1347_v57 }
 0x223   :  { %1429 = vst.msk [vmem:[%s2455_s9 + $0x28] sm:$0xff] %vm1423_vm2, %v1396_v40 }
 0x226   :  { %v1349_v58 = vpop.f32.mrf.mxu0  ;;  %v1398_v42 = vpop.f32.mrf.mxu1 }
 0x227   :  { %v1350_v60 = vadd.f32 %v2364_v38, %v1349_v58 }
 0x229   :  { %v1399_v61 = vadd.f32 %v1398_v42, %v1350_v60 }
 0x22b   :  { %1430 = vst.msk [vmem:[%s2455_s9 + $0x30] sm:$0xff] %vm1423_vm2, %v1399_v61 }
 0x22e   :  { %v1351_v62 = vpop.f32.mrf.mxu0  ;;  %v1400_v63 = vpop.f32.mrf.mxu1 }
 0x22f   :  { %v1352_v1 = vadd.f32 %v2364_v38, %v1351_v62 }
 0x231   :  { %v1401_v2 = vadd.f32 %v1400_v63, %v1352_v1 }
 0x233   :  { %1431 = vst.msk [vmem:[%s2455_s9 + $0x38] sm:$0xff] %vm1423_vm2, %v1401_v2 }
 0x236   :  { %v1354_v5 = vpop.f32.mrf.mxu0  ;;  %v1403_v6 = vpop.f32.mrf.mxu1 }
 0x237   :  { %v1355_v7 = vadd.f32 %v2364_v38, %v1354_v5 }
 0x239   :  { %v1404_v9 = vadd.f32 %v1403_v6, %v1355_v7 }
 0x23b   :  { %1432 = vst.msk [vmem:[%s2455_s9 + $0x40] sm:$0xff] %vm1423_vm2, %v1404_v9 }
 0x23e   :  { %v1356_v50 = vpop.f32.mrf.mxu0  ;;  %v1405_v10 = vpop.f32.mrf.mxu1 }
 0x23f   :  { %v1357_v12 = vadd.f32 %v2364_v38, %v1356_v50 }
 0x241   :  { %v1406_v13 = vadd.f32 %v1405_v10, %v1357_v12 }
 0x243   :  { %1433 = vst.msk [vmem:[%s2455_s9 + $0x48] sm:$0xff] %vm1423_vm2, %v1406_v13 }
 0x246   :  { %v1359_v14 = vpop.f32.mrf.mxu0  ;;  %v1408_v16 = vpop.f32.mrf.mxu1 }
 0x247   :  { %v1360_v3 = vadd.f32 %v2364_v38, %v1359_v14 }
 0x249   :  { %v1409_v18 = vadd.f32 %v1408_v16, %v1360_v3 }
 0x24b   :  { %1434 = vst.msk [vmem:[%s2455_s9 + $0x50] sm:$0xff] %vm1423_vm2, %v1409_v18 }
 0x24e   :  { %v1361_v20 = vpop.f32.mrf.mxu0  ;;  %v1410_v4 = vpop.f32.mrf.mxu1 }
 0x24f   :  { %v1362_v21 = vadd.f32 %v2364_v38, %v1361_v20 }
 0x251   :  { %v1411_v22 = vadd.f32 %v1410_v4, %v1362_v21 }
 0x253   :  { %1435 = vst.msk [vmem:[%s2455_s9 + $0x58] sm:$0xff] %vm1423_vm2, %v1411_v22 }
 0x256   :  { %v1364_v23 = vpop.f32.mrf.mxu0  ;;  %v1413_v24 = vpop.f32.mrf.mxu1 }
 0x257   :  { %v1365_v25 = vadd.f32 %v2364_v38, %v1364_v23 }
 0x259   :  { %v1414_v17 = vadd.f32 %v1413_v24, %v1365_v25 }
 0x25b   :  { %1436 = vst.msk [vmem:[%s2455_s9 + $0x60] sm:$0xff] %vm1423_vm2, %v1414_v17 }
 0x25e   :  { %v1366_v59 = vpop.f32.mrf.mxu0  ;;  %v1415_v30 = vpop.f32.mrf.mxu1 }
 0x25f   :  { %v1367_v19 = vadd.f32 %v2364_v38, %v1366_v59 }
 0x261   :  { %v1416_v0 = vadd.f32 %v1415_v30, %v1367_v19 }
 0x263   :  { %1437 = vst.msk [vmem:[%s2455_s9 + $0x68] sm:$0xff] %vm1423_vm2, %v1416_v0 }
 0x266   :  { %v1369_v31 = vpop.f32.mrf.mxu0  ;;  %v1418_v32 = vpop.f32.mrf.mxu1 }
 0x267   :  { %v1370_v33 = vadd.f32 %v2364_v38, %v1369_v31 }
 0x269   :  { %v1419_v34 = vadd.f32 %v1418_v32, %v1370_v33 }
 0x26b   :  { %1438 = vst.msk [vmem:[%s2455_s9 + $0x70] sm:$0xff] %vm1423_vm2, %v1419_v34 }
 0x26e   :  { %v1371_v35 = vpop.f32.mrf.mxu0  ;;  %v1420_v37 = vpop.f32.mrf.mxu1 }
 0x26f   :  { %v1372_v36 = vadd.f32 %v2364_v38, %v1371_v35 }
 0x271   :  { %v1421_v39 = vadd.f32 %v1420_v37, %v1372_v36 }
 0x273   :  { %1439 = vst.msk [vmem:[%s2455_s9 + $0x78] sm:$0xff] %vm1423_vm2, %v1421_v39 }

</bundles_post_ra>
